<compile_context>
chip_gen: v6e
topology: v6e:2x2x1
jax: 0.10.0
libtpu: 0.0.40
codegen_flags: <defaults>
</compile_context>

<pallas_src>
import jax
import jax.numpy as jnp
from jax.experimental import pallas as pl
from jax.experimental.pallas import tpu as pltpu


def _cdiv(a, b):
    return -(-a // b)


def _round_up(x, m):
    return ((x + m - 1) // m) * m


def _choose_tiles(batch, max_tile_rows, min_tiles):
    """Balanced batch tiling: tile rows are a multiple of 8 sublanes and tiles are
    near-equal in size (avoids a nearly-empty ragged last tile)."""
    n_tiles = max(_cdiv(batch, max_tile_rows), min_tiles, 1)
    n_tiles = min(n_tiles, max(_cdiv(batch, 8), 1))   # keep >= 8 rows per tile
    tm = _round_up(_cdiv(batch, n_tiles), 8)
    grid = _cdiv(batch, tm)
    return tm, grid


def qnet_mlp_kernel(x_ref, w1_ref, b1_ref, w2_ref, b2_ref, w3_ref, b3_ref, o_ref):
    # x arrives as f32 (single HBM pass); cast to bf16 in VMEM for the MXU.
    x = x_ref[...].astype(jnp.bfloat16)
    # Layer 1: Linear(in_dim -> hidden_pad) + ReLU.  f32 accumulate, f32 VPU ops.
    h = jnp.dot(x, w1_ref[...], preferred_element_type=jnp.float32)
    h = jnp.maximum(h + b1_ref[...], 0.0)
    # Layer 2: Linear(hidden_pad -> hidden_pad) + ReLU (lane-dense 128-wide vregs).
    h = jnp.dot(h.astype(jnp.bfloat16), w2_ref[...], preferred_element_type=jnp.float32)
    h = jnp.maximum(h + b2_ref[...], 0.0)
    # Output layer: Linear(hidden_pad -> n_actions), no activation.  Padded hidden
    # rows of w3 are zero (and h's padded lanes are exactly zero), so numerics match
    # the unpadded model.  Narrow (tm, n_actions) store -> tiny HBM writeback.
    out = jnp.dot(h.astype(jnp.bfloat16), w3_ref[...], preferred_element_type=jnp.float32)
    o_ref[...] = (out + b3_ref[...]).astype(o_ref.dtype)


def prepare_params(params):
    """One-time prep: cast weights to bf16 and zero-pad the hidden dim to a multiple
    of 128 lanes.  Call once (outside the training/eval loop) and reuse."""
    w1, b1, w2, b2, w3, b3 = params
    in_dim, hidden = w1.shape
    n_actions = w3.shape[1]
    hp = _round_up(hidden, 128)

    w1p = jnp.zeros((in_dim, hp), jnp.bfloat16).at[:, :hidden].set(w1.astype(jnp.bfloat16))
    b1p = jnp.zeros((1, hp), jnp.float32).at[:, :hidden].set(b1.astype(jnp.float32))
    w2p = jnp.zeros((hp, hp), jnp.bfloat16).at[:hidden, :hidden].set(w2.astype(jnp.bfloat16))
    b2p = jnp.zeros((1, hp), jnp.float32).at[:, :hidden].set(b2.astype(jnp.float32))
    w3p = jnp.zeros((hp, n_actions), jnp.bfloat16).at[:hidden, :].set(w3.astype(jnp.bfloat16))
    b3p = b3.astype(jnp.float32).reshape(1, n_actions)
    return (w1p, b1p, w2p, b2p, w3p, b3p)


def qnetwork_forward(state, prepared_params, *, max_tile_rows=1024, min_tiles=1):
    """state: (B, H, W) f32 -> Q-values (B, n_actions) f32.

    prepared_params: output of prepare_params().
    min_tiles=2 is recommended on v7x (2 TensorCores) when B >= 16.
    """
    w1p, b1p, w2p, b2p, w3p, b3p = prepared_params
    B = state.shape[0]
    x = state.reshape(B, -1)                       # torch: state.view(state.size(0), -1)
    in_dim = x.shape[1]
    hp = w1p.shape[1]
    n_actions = w3p.shape[1]

    tm, grid = _choose_tiles(B, max_tile_rows, min_tiles)

    const = lambda i: (0, 0)                       # weights/biases: DMA'd once, VMEM-resident
    out = pl.pallas_call(
        qnet_mlp_kernel,
        out_shape=jax.ShapeDtypeStruct((B, n_actions), jnp.float32),
        grid=(grid,),
        in_specs=[
            pl.BlockSpec((tm, in_dim), lambda i: (i, 0)),   # x: tiled over batch (f32)
            pl.BlockSpec((in_dim, hp), const),              # w1 (bf16, hidden-padded)
            pl.BlockSpec((1, hp), const),                   # b1 (f32, hidden-padded)
            pl.BlockSpec((hp, hp), const),                  # w2 (bf16, hidden-padded)
            pl.BlockSpec((1, hp), const),                   # b2 (f32, hidden-padded)
            pl.BlockSpec((hp, n_actions), const),           # w3 (bf16, hidden-padded rows)
            pl.BlockSpec((1, n_actions), const),            # b3 (f32)
        ],
        out_specs=pl.BlockSpec((tm, n_actions), lambda i: (i, 0)),
        compiler_params=pltpu.CompilerParams(
            dimension_semantics=("parallel",),     # batch tiles independent (v7x dual-TC)
        ),
    )(x, w1p, b1p, w2p, b2p, w3p, b3p)
    return out


def init_params(key, in_dim, hidden_size, n_actions):
    """Deterministic synthetic init (shapes match nn.Linear; values are synthetic)."""
    ks = jax.random.split(key, 6)

    def lin(kw, kb, fan_in, fan_out):
        bound = 1.0 / jnp.sqrt(jnp.float32(fan_in))
        w = jax.random.uniform(kw, (fan_in, fan_out), jnp.float32, -bound, bound)
        b = jax.random.uniform(kb, (1, fan_out), jnp.float32, -bound, bound)
        return w, b

    w1, b1 = lin(ks[0], ks[1], in_dim, hidden_size)
    w2, b2 = lin(ks[2], ks[3], hidden_size, hidden_size)
    w3, b3 = lin(ks[4], ks[5], hidden_size, n_actions)
    return (w1, b1, w2, b2, w3, b3)


def reference_forward_f32(state, params):
    """Pure-JAX f32 reference mirroring the PyTorch forward (use_conv=False)."""
    w1, b1, w2, b2, w3, b3 = params
    x = state.reshape(state.shape[0], -1)
    h = jnp.maximum(x @ w1 + b1, 0.0)
    h = jnp.maximum(h @ w2 + b2, 0.0)
    return h @ w3 + b3


def reference_forward_bf16(state, params):
    """Mixed-precision reference matching the kernel's bf16-stream / f32-acc math."""
    w1, b1, w2, b2, w3, b3 = params
    x = state.reshape(state.shape[0], -1).astype(jnp.bfloat16)
    h = jnp.dot(x, w1.astype(jnp.bfloat16), preferred_element_type=jnp.float32) + b1
    h = jnp.maximum(h, 0.0)
    h = jnp.dot(h.astype(jnp.bfloat16), w2.astype(jnp.bfloat16),
                preferred_element_type=jnp.float32) + b2
    h = jnp.maximum(h, 0.0)
    return jnp.dot(h.astype(jnp.bfloat16), w3.astype(jnp.bfloat16),
                   preferred_element_type=jnp.float32) + b3


if __name__ == "__main__":
    # Small shapes consistent with QNetwork(input_dims=(16, 16), n_actions=4,
    # hidden_layers=2, hidden_size=32, use_conv=False).
    B, H, W = 2, 16, 16
    hidden_size = 32
    n_actions = 4
    in_dim = H * W  # conv_out_size = input_dims[0] * input_dims[1]

    key = jax.random.PRNGKey(0)
    k_state, k_params = jax.random.split(key)
    state = jax.random.normal(k_state, (B, H, W), jnp.float32)
    params = init_params(k_params, in_dim, hidden_size, n_actions)

    # One-time param prep (bf16 cast + hidden lane-padding), reused every forward.
    prepared = jax.tree_util.tree_map(jax.block_until_ready, prepare_params(params))

    fwd = jax.jit(qnetwork_forward)
    q = fwd(state, prepared)
    q = jax.block_until_ready(q)
    assert q.shape == (B, n_actions)

    # Tight check vs. a mixed-precision reference using the same bf16/f32 math.
    q_ref_mixed = reference_forward_bf16(state, params)
    assert jnp.allclose(q, q_ref_mixed, atol=2e-3, rtol=2e-3)

    # Loose check vs. the full-f32 PyTorch-equivalent forward (bf16 stream precision).
    q_ref_f32 = reference_forward_f32(state, params)
    assert jnp.allclose(q, q_ref_f32, atol=5e-2, rtol=5e-2)

    # TODO(synk): use_conv=True branch (3x Conv2d 3x3 + ReLU) not implemented;
    # default constructor path (use_conv=False) is what is reproduced here.
    print("KERNEL_OK")
</pallas_src>

<mosaic_0001>
module attributes {stable_mosaic.version = 11 : i64} {
  func.func @qnet_mlp_kernel(%arg0: i32, %arg1: memref<8x256xf32, #tpu.memory_space<vmem>>, %arg2: memref<256x128xbf16, #tpu.memory_space<vmem>>, %arg3: memref<1x128xf32, #tpu.memory_space<vmem>>, %arg4: memref<128x128xbf16, #tpu.memory_space<vmem>>, %arg5: memref<1x128xf32, #tpu.memory_space<vmem>>, %arg6: memref<128x4xbf16, #tpu.memory_space<vmem>>, %arg7: memref<1x4xf32, #tpu.memory_space<vmem>>, %arg8: memref<8x4xf32, #tpu.memory_space<vmem>>) attributes {dimension_semantics = [#tpu.dimension_semantics<parallel>], iteration_bounds = array<i64: 1>, scalar_prefetch = 0 : i64, scratch_operands = 0 : i64, tpu.core_type = #tpu.core_type<tc>, window_params = [{transform_indices = @transform_0, window_bounds = array<i64: 8, 256>}, {pipeline_mode = #tpu.pipeline_mode<synchronous>, transform_indices = @transform_1, window_bounds = array<i64: 256, 128>}, {pipeline_mode = #tpu.pipeline_mode<synchronous>, transform_indices = @transform_2, window_bounds = array<i64: 1, 128>}, {pipeline_mode = #tpu.pipeline_mode<synchronous>, transform_indices = @transform_3, window_bounds = array<i64: 128, 128>}, {pipeline_mode = #tpu.pipeline_mode<synchronous>, transform_indices = @transform_4, window_bounds = array<i64: 1, 128>}, {pipeline_mode = #tpu.pipeline_mode<synchronous>, transform_indices = @transform_5, window_bounds = array<i64: 128, 4>}, {pipeline_mode = #tpu.pipeline_mode<synchronous>, transform_indices = @transform_6, window_bounds = array<i64: 1, 4>}, {transform_indices = @transform_7, window_bounds = array<i64: 8, 4>}]} {
    %c0 = arith.constant 0 : index
    %c0_0 = arith.constant 0 : index
    %0 = vector.load %arg1[%c0, %c0_0] : memref<8x256xf32, #tpu.memory_space<vmem>>, vector<8x256xf32>
    %1 = arith.truncf %0 : vector<8x256xf32> to vector<8x256xbf16>
    %c0_1 = arith.constant 0 : index
    %c0_2 = arith.constant 0 : index
    %2 = vector.load %arg2[%c0_1, %c0_2] : memref<256x128xbf16, #tpu.memory_space<vmem>>, vector<256x128xbf16>
    %cst = arith.constant dense<0.000000e+00> : vector<8x128xf32>
    %3 = tpu.matmul %1, %2, %cst {dimension_numbers = #tpu.dot_dimension_numbers<[1], [0], [0], [1], [0, 0, 1, 1], [], []>} : vector<8x256xbf16>, vector<256x128xbf16>, vector<8x128xf32> -> vector<8x128xf32>
    %c0_3 = arith.constant 0 : index
    %c0_4 = arith.constant 0 : index
    %4 = vector.load %arg3[%c0_3, %c0_4] : memref<1x128xf32, #tpu.memory_space<vmem>>, vector<1x128xf32>
    %5 = vector.broadcast %4 : vector<1x128xf32> to vector<8x128xf32>
    %6 = arith.addf %3, %5 : vector<8x128xf32>
    %cst_5 = arith.constant 0.000000e+00 : f32
    %7 = vector.broadcast %cst_5 : f32 to vector<8x128xf32>
    %8 = arith.maximumf %6, %7 : vector<8x128xf32>
    %9 = arith.truncf %8 : vector<8x128xf32> to vector<8x128xbf16>
    %c0_6 = arith.constant 0 : index
    %c0_7 = arith.constant 0 : index
    %10 = vector.load %arg4[%c0_6, %c0_7] : memref<128x128xbf16, #tpu.memory_space<vmem>>, vector<128x128xbf16>
    %cst_8 = arith.constant dense<0.000000e+00> : vector<8x128xf32>
    %11 = tpu.matmul %9, %10, %cst_8 {dimension_numbers = #tpu.dot_dimension_numbers<[1], [0], [0], [1], [0, 0, 1, 1], [], []>} : vector<8x128xbf16>, vector<128x128xbf16>, vector<8x128xf32> -> vector<8x128xf32>
    %c0_9 = arith.constant 0 : index
    %c0_10 = arith.constant 0 : index
    %12 = vector.load %arg5[%c0_9, %c0_10] : memref<1x128xf32, #tpu.memory_space<vmem>>, vector<1x128xf32>
    %13 = vector.broadcast %12 : vector<1x128xf32> to vector<8x128xf32>
    %14 = arith.addf %11, %13 : vector<8x128xf32>
    %cst_11 = arith.constant 0.000000e+00 : f32
    %15 = vector.broadcast %cst_11 : f32 to vector<8x128xf32>
    %16 = arith.maximumf %14, %15 : vector<8x128xf32>
    %17 = arith.truncf %16 : vector<8x128xf32> to vector<8x128xbf16>
    %c0_12 = arith.constant 0 : index
    %c0_13 = arith.constant 0 : index
    %18 = vector.load %arg6[%c0_12, %c0_13] : memref<128x4xbf16, #tpu.memory_space<vmem>>, vector<128x4xbf16>
    %cst_14 = arith.constant dense<0.000000e+00> : vector<8x4xf32>
    %19 = tpu.matmul %17, %18, %cst_14 {dimension_numbers = #tpu.dot_dimension_numbers<[1], [0], [0], [1], [0, 0, 1, 1], [], []>} : vector<8x128xbf16>, vector<128x4xbf16>, vector<8x4xf32> -> vector<8x4xf32>
    %c0_15 = arith.constant 0 : index
    %c0_16 = arith.constant 0 : index
    %20 = vector.load %arg7[%c0_15, %c0_16] : memref<1x4xf32, #tpu.memory_space<vmem>>, vector<1x4xf32>
    %21 = vector.broadcast %20 : vector<1x4xf32> to vector<8x4xf32>
    %22 = arith.addf %19, %21 : vector<8x4xf32>
    %c0_17 = arith.constant 0 : index
    %c0_18 = arith.constant 0 : index
    %23 = vector.load %arg8[%c0_17, %c0_18] : memref<8x4xf32, #tpu.memory_space<vmem>>, vector<8x4xf32>
    tpu.vector_store %arg8[%c0_17, %c0_18], %22 {strides = array<i32>} : memref<8x4xf32, #tpu.memory_space<vmem>>, vector<8x4xf32>,
    return
  }
  func.func @transform_0(%arg0: i32) -> (i32, i32) {
    %c0_i32 = arith.constant 0 : i32
    %c0_i32_0 = arith.constant 0 : i32
    return %arg0, %c0_i32 : i32, i32
  }
  func.func @transform_1(%arg0: i32) -> (i32, i32) {
    %c0_i32 = arith.constant 0 : i32
    %c0_i32_0 = arith.constant 0 : i32
    %c0_i32_1 = arith.constant 0 : i32
    return %c0_i32, %c0_i32_0 : i32, i32
  }
  func.func @transform_2(%arg0: i32) -> (i32, i32) {
    %c0_i32 = arith.constant 0 : i32
    %c0_i32_0 = arith.constant 0 : i32
    %c0_i32_1 = arith.constant 0 : i32
    return %c0_i32, %c0_i32_0 : i32, i32
  }
  func.func @transform_3(%arg0: i32) -> (i32, i32) {
    %c0_i32 = arith.constant 0 : i32
    %c0_i32_0 = arith.constant 0 : i32
    %c0_i32_1 = arith.constant 0 : i32
    return %c0_i32, %c0_i32_0 : i32, i32
  }
  func.func @transform_4(%arg0: i32) -> (i32, i32) {
    %c0_i32 = arith.constant 0 : i32
    %c0_i32_0 = arith.constant 0 : i32
    %c0_i32_1 = arith.constant 0 : i32
    return %c0_i32, %c0_i32_0 : i32, i32
  }
  func.func @transform_5(%arg0: i32) -> (i32, i32) {
    %c0_i32 = arith.constant 0 : i32
    %c0_i32_0 = arith.constant 0 : i32
    %c0_i32_1 = arith.constant 0 : i32
    return %c0_i32, %c0_i32_0 : i32, i32
  }
  func.func @transform_6(%arg0: i32) -> (i32, i32) {
    %c0_i32 = arith.constant 0 : i32
    %c0_i32_0 = arith.constant 0 : i32
    %c0_i32_1 = arith.constant 0 : i32
    return %c0_i32, %c0_i32_0 : i32, i32
  }
  func.func @transform_7(%arg0: i32) -> (i32, i32) {
    %c0_i32 = arith.constant 0 : i32
    %c0_i32_0 = arith.constant 0 : i32
    return %arg0, %c0_i32 : i32, i32
  }
}

</mosaic_0001>

<bundles_post_ra>
// kernel: qnetwork_forward.1
= control target key start
LH: loop header
LB: loop body
LE: loop exit
PB: predicated region body
PF: predicated region fallthrough
CT: control target
= control target key end

     0   :  { %12 = vsyncpa [#allocation3], 0  ;;  %s831_s0 = inlined_call_operand.vmem [shape: f32[2,256], index: 0, kind: input, shape index: {}]   ;;  %s832_s1 = inlined_call_operand.hbm [shape: bf16[256,128], index: 1, kind: input, shape index: {}]   ;;  %s833_s2 = inlined_call_operand.vmem [shape: f32[1,128], index: 2, kind: input, shape index: {}]   ;;  %s834_s3 = inlined_call_operand.vmem [shape: bf16[128,128], index: 3, kind: input, shape index: {}]   ;;  %s835_s4 = inlined_call_operand.vmem [shape: f32[1,128], index: 4, kind: input, shape index: {}]   ;;  %s836_s5 = inlined_call_operand.vmem [shape: bf16[128,4], index: 5, kind: input, shape index: {}]   ;;  %s837_s6 = inlined_call_operand.vmem [shape: f32[1,4], index: 6, kind: input, shape index: {}]   ;;  %s838_s7 = inlined_call_operand.hbm [shape: f32[2,4], index: 7, kind: output, shape index: {}]  }
   0x1   :  { %13 = vsyncpa [#allocation4], 0  ;;  %s696_s24 = smov [#allocation2]  }
   0x2   :  { %s21_s25 = sshll.u32 %s696_s24, 4  ;;  %s22_s25 = int_to_ptr.vmem [resolvable:$true] %s21_s25 }
   0x3   :  { %s660_s26 = scalar_lea.vmem %s22_s25, 2048  ;;  %p665_p1 = scmp.lt.s32.totalorder %s22_s25, %s22_s25 }
   0x4   :  { %p661_p0 = scmp.ne.s32.totalorder %s22_s25, %s660_s26  ;;  %p666_p2 = scmp.lt.s32.totalorder %s660_s26, %s660_s26 }
   0x6   :  { %p667_p3 = por %p666_p2, %p665_p1 }
   0x8   :  { %p668_p4 = pnand %p667_p3, %p661_p0 }
   0xa   :  { %671 = shalt.err (!%p668_p4)
}
   0xb   :  { %s697_s27 = smov 64   ;;  %s698_s28 = smov 4  }
   0xc   :  { %27 = dma.hbm_to_vmem [thread:$0]  %s832_s1, 2048, %s22_s25, [#allocation3], %s697_s27, %s697_s27, %s698_s28  }
   0xd   :  { %692 = dma.done.wait [#allocation3], 2048  }
   0xe   :  { %693 = vsyncadd [#allocation3], 4294965248  ;;  %v699_v0 = vmov 0.0   ;;  %v616_v1 = vld [vmem:[#allocation2 + $0x78] sm:$0xff]   ;;  %v618_v3 = vld [vmem:[#allocation2 + $0x70] sm:$0xff]   ;;  %vm700_vm0 = vmmov 0  }
   0xf   :  { %567 = vmatprep.subr.bf16.mxu1 %v699_v0  ;;  %v617_v2 = vld [vmem:[#allocation2 + $0x38] sm:$0xff]   ;;  %527 = vmatprep.subr.bf16.mxu0 %v616_v1  ;;  %v619_v4 = vld [vmem:[#allocation2 + $0x30] sm:$0xff]   ;;  %v620_v5 = vld [vmem:[#allocation2 + $0x68] sm:$0xff]   ;;  %vm473_vm1 = vcmask 31744  }
  0x10   :  { %528 = vmatpush3.bf16.msra.mxu0 %v617_v2  ;;  %v621_v6 = vld [vmem:[#allocation2 + $0x28] sm:$0xff]   ;;  %v622_v7 = vld [vmem:[#allocation2 + $0x60] sm:$0xff]   ;;  %v624_v9 = vld [vmem:[#allocation2 + $0x58] sm:$0xff]   ;;  %583 = vmatprep.mubr.msk.bf16.mxu1 %vm700_vm0, %v699_v0 }
  0x11   :  { %529 = vmatprep.subr.bf16.mxu0 %v618_v3  ;;  %v623_v8 = vld [vmem:[#allocation2 + $0x20] sm:$0xff]   ;;  %v625_v10 = vld [vmem:[#allocation2 + $0x18] sm:$0xff]   ;;  %v626_v11 = vld [vmem:[#allocation2 + $0x50] sm:$0xff]  }
  0x12   :  { %v627_v12 = vld [vmem:[#allocation2 + $0x10] sm:$0xff]   ;;  %v650_v13 = vld.sshfl [vmem:[%s831_s0] sm:$0xff pattern:$0x76325410]  ;;  %v634_v15 = vld [vmem:[%s834_s3 + $0x38] sm:$0xff]  }
  0x13   :  { %v651_v14 = vld.sshfl [vmem:[%s831_s0 + $0x8] sm:$0xff pattern:$0x76325410]  ;;  %568 = vmatpush3.bf16.msra.mxu1 %v634_v15  ;;  %v635_v17 = vld [vmem:[%s834_s3 + $0x30] sm:$0xff]   ;;  %v630_v20 = vld [vmem:[#allocation2 + $0x40] sm:$0xff]  }
  0x14   :  { %530 = vmatpush3.bf16.msra.mxu0 %v619_v4  ;;  %v628_v16 = vld [vmem:[#allocation2 + $0x48] sm:$0xff]   ;;  %v67_v19 = vcombine.high %v650_v13, %v651_v14  ;;  %569 = vmatprep.subr.bf16.mxu1 %v699_v0  ;;  %v631_v23 = vld [vmem:[#allocation2] sm:$0xff]   ;;  %v66_v24 = vcombine.low %v650_v13, %v651_v14  ;;  %v638_v27 = vld [vmem:[%s834_s3 + $0x18] sm:$0xff]  }
  0x15   :  { %531 = vmatprep.subr.bf16.mxu0 %v620_v5  ;;  %v629_v18 = vld [vmem:[#allocation2 + $0x8] sm:$0xff]   ;;  %v637_v25 = vld [vmem:[%s834_s3 + $0x20] sm:$0xff]   ;;  %v639_v28 = vld [vmem:[%s834_s3 + $0x10] sm:$0xff]  }
  0x16   :  { %v636_v21 = vld [vmem:[%s834_s3 + $0x28] sm:$0xff]   ;;  %v71_v22 = vpack.c.bf16 %v67_v19, %v67_v19  ;;  %v70_v26 = vpack.c.bf16 %v66_v24, %v66_v24  ;;  %v641_v30 = vld [vmem:[%s834_s3] sm:$0xff]   ;;  %v642_v31 = vld [vmem:[%s836_s5 + $0x38] sm:$0xff]  }
  0x17   :  { %570 = vmatpush3.bf16.msra.mxu1 %v635_v17  ;;  %v640_v29 = vld [vmem:[%s834_s3 + $0x8] sm:$0xff]   ;;  %v643_v32 = vld [vmem:[%s836_s5 + $0x30] sm:$0xff]   ;;  %v645_v34 = vld [vmem:[%s836_s5 + $0x20] sm:$0xff]  }
  0x18   :  { %532 = vmatpush3.bf16.msra.mxu0 %v621_v6  ;;  %239 = vmatprep.mubr.bf16.mxu0 %v71_v22  ;;  %v644_v33 = vld [vmem:[%s836_s5 + $0x28] sm:$0xff]   ;;  %v646_v35 = vld [vmem:[%s836_s5 + $0x18] sm:$0xff]   ;;  %v647_v36 = vld [vmem:[%s836_s5 + $0x10] sm:$0xff]  }
  0x19   :  { %533 = vmatprep.subr.bf16.mxu0 %v622_v7  ;;  %571 = vmatprep.subr.bf16.mxu1 %v699_v0  ;;  %v492_v38 = vld [vmem:[%s833_s2] ss:$0 sm:$0xff]  ;;  %v648_v46 = vld [vmem:[%s836_s5 + $0x8] sm:$0xff]  }
  0x1a   :  { %v649_v47 = vld [vmem:[%s836_s5] sm:$0xff]  }
  0x1b   :  { %572 = vmatpush3.bf16.msra.mxu1 %v636_v21  ;;  %v509_v48 = vld [vmem:[%s835_s4] ss:$0 sm:$0xff] }
  0x1c   :  { %534 = vmatpush3.bf16.msra.mxu0 %v623_v8  ;;  %573 = vmatprep.subr.bf16.mxu1 %v699_v0  ;;  %v518_v56 = vld [vmem:[%s837_s6] ss:$0 sm:$0xff] }
  0x1d   :  { %535 = vmatprep.subr.bf16.mxu0 %v624_v9 }
  0x1f   :  { %574 = vmatpush3.bf16.msra.mxu1 %v637_v25 }
  0x20   :  { %536 = vmatpush3.bf16.msra.mxu0 %v625_v10  ;;  %575 = vmatprep.subr.bf16.mxu1 %v699_v0 }
  0x21   :  { %537 = vmatprep.subr.bf16.mxu0 %v626_v11 }
  0x23   :  { %576 = vmatpush3.bf16.msra.mxu1 %v638_v27 }
  0x24   :  { %538 = vmatpush3.bf16.msra.mxu0 %v627_v12  ;;  %577 = vmatprep.subr.bf16.mxu1 %v699_v0 }
  0x25   :  { %539 = vmatprep.subr.bf16.mxu0 %v628_v16 }
  0x27   :  { %578 = vmatpush3.bf16.msra.mxu1 %v639_v28 }
  0x28   :  { %540 = vmatpush3.bf16.msra.mxu0 %v629_v18  ;;  %579 = vmatprep.subr.bf16.mxu1 %v699_v0 }
  0x29   :  { %541 = vmatprep.subr.bf16.mxu0 %v630_v20 }
  0x2b   :  { %580 = vmatpush3.bf16.msra.mxu1 %v640_v29 }
  0x2c   :  { %542 = vmatpush3.bf16.msra.mxu0 %v631_v23  ;;  %581 = vmatprep.subr.bf16.mxu1 %v699_v0 }
  0x2d   :  { %587 = vmatprep.subr.bf16.mxu0 %v699_v0 }
  0x2f   :  { %240 = vmatmul.mubr.bf16.vlgmr.msra.gmra.mxu0 %v70_v26  ;;  %582 = vmatpush3.bf16.msra.mxu1 %v641_v30 }
  0x30   :  { %603 = vmatprep.mubr.msk.bf16.mxu0 %vm700_vm0, %v699_v0  ;;  %588 = vmatpush3.bf16.msra.mxu0 %v642_v31 }
  0x31   :  { %589 = vmatprep.subr.bf16.mxu0 %v699_v0 }
  0x34   :  { %590 = vmatpush3.bf16.msra.mxu0 %v643_v32 }
  0x35   :  { %591 = vmatprep.subr.bf16.mxu0 %v699_v0 }
  0x38   :  { %592 = vmatpush3.bf16.msra.mxu0 %v644_v33 }
  0x39   :  { %593 = vmatprep.subr.bf16.mxu0 %v699_v0 }
  0x3c   :  { %594 = vmatpush3.bf16.msra.mxu0 %v645_v34 }
  0x3d   :  { %595 = vmatprep.subr.bf16.mxu0 %v699_v0 }
  0x40   :  { %596 = vmatpush3.bf16.msra.mxu0 %v646_v35 }
  0x41   :  { %597 = vmatprep.subr.bf16.mxu0 %v699_v0 }
  0x44   :  { %598 = vmatpush3.bf16.msra.mxu0 %v647_v36 }
  0x45   :  { %599 = vmatprep.subr.bf16.mxu0 %v699_v0 }
  0x48   :  { %600 = vmatpush3.bf16.msra.mxu0 %v648_v46 }
  0x49   :  { %601 = vmatprep.subr.bf16.mxu0 %v699_v0 }
  0x4c   :  { %602 = vmatpush3.bf16.msra.mxu0 %v649_v47 }
  0xef   :  { %v543_v37 = vpop.f32.mrf.mxu0 }
  0xf1   :  { %v544_v39 = vpop.f32.mrf.mxu0 }
  0xf2   :  { %v545_v40 = vadd.f32 %v544_v39, %v543_v37 }
  0xf3   :  { %v546_v41 = vpop.f32.mrf.mxu0 }
  0xf4   :  { %v242_v42 = vadd.f32 %v545_v40, %v492_v38 }
  0xf5   :  { %v547_v43 = vpop.f32.mrf.mxu0 }
  0xf6   :  { %v247_v44 = vmax.f32 %v242_v42, 0.0 }
  0xf8   :  { %v248_v45 = vpack.c.bf16 %v247_v44, %v247_v44 }
  0xfa   :  { %584 = vmatmul.mubr.bf16.vlgmr.msra.gmra.mxu1 %v248_v45 }
 0x1ba   :  { %v354_v49 = vpop.f32.mrf.mxu1 }
 0x1bb   :  { %v355_v50 = vadd.f32 %v509_v48, %v354_v49 }
 0x1bc   :  { %v585_v51 = vpop.f32.mrf.mxu1 }
 0x1bd   :  { %v360_v52 = vmax.f32 %v355_v50, 0.0 }
 0x1be   :  { %v357_v53 = vpop.f32.mrf.mxu1 }
 0x1bf   :  { %v361_v54 = vpack.c.bf16 %v360_v52, %v360_v52 }
 0x1c0   :  { %v586_v55 = vpop.f32.mrf.mxu1 }
 0x1c1   :  { %604 = vmatmul.mubr.bf16.vlgmr.msra.gmra.mxu0 %v361_v54 }
 0x281   :  { %v467_v57 = vpop.f32.mrf.mxu0 }
 0x282   :  { %v468_v58 = vadd.f32 %v518_v56, %v467_v57 }
 0x283   :  { %v605_v59 = vpop.f32.mrf.mxu0 }
 0x284   :  { %474 = vst.msk [vmem:[#allocation5] sm:$0xff] %vm473_vm1, %v468_v58 }
 0x285   :  { %v470_v60 = vpop.f32.mrf.mxu0 }
 0x287   :  { %v606_v61 = vpop.f32.mrf.mxu0 }
 0x288   :  { %479 = vsyncadd [#allocation4], 96  ;;  %s701_s4 = smov [#allocation5]  }
 0x289   :  { %s480_s5 = sshll.u32 %s701_s4, 4  ;;  %s481_s5 = int_to_ptr.vmem [resolvable:$true] %s480_s5 }
 0x28a   :  { %s672_s21 = scalar_lea.vmem %s481_s5, 32  ;;  %s676_s22 = scalar_lea.vmem %s481_s5, 128 }
 0x28b   :  { %p673_p5 = scmp.ne.s32.totalorder %s481_s5, %s672_s21  ;;  %p677_p6 = scmp.lt.s32.totalorder %s481_s5, %s481_s5 }
 0x28c   :  { %p678_p7 = scmp.lt.s32.totalorder %s676_s22, %s672_s21 }
 0x28e   :  { %p679_p8 = por %p678_p7, %p677_p6 }
 0x290   :  { %p680_p9 = pnand %p679_p8, %p673_p5 }
 0x292   :  { %683 = shalt.err (!%p680_p9)
}
 0x293   :  { %s702_s6 = smov 32   ;;  %s703_s23 = smov 2  }
 0x294   :  { %486 = dma.vmem_to_hbm [thread:$0]  %s481_s5, 32, %s838_s7, [#allocation4], %s702_s6, %s702_s6, %s703_s23  }
 0x295   :  { %694 = dma.done.wait [#allocation4], 128  }
 0x296   :  { %695 = vsyncadd [#allocation4], 4294967168 }
 0x297   :  { %490 = vsyncpa [#allocation3], 1 }
 0x298   :  { %491 = vsyncpa [#allocation4], 1 }

</bundles_post_ra>
